<compile_context>
chip_gen: v5e
topology: v5e:2x2
jax: 0.10.0
libtpu: 0.0.40
codegen_flags: <defaults>
</compile_context>

<pallas_src>
import math
import numpy as np
import jax
import jax.numpy as jnp
from jax.experimental import pallas as pl
from jax.experimental.pallas import tpu as pltpu

# ---- hyperparameters (mirroring the module's globals) ------------------------
B        = 2        # batch
S        = 8        # sequence length (conv "H")
N_MFCC   = 32       # mel features (conv "W")
D_MODEL  = 32       # must equal N_MFCC so the residual add is shape-consistent
N_HEADS  = 2
D_K      = 8
D_V      = 8
D_FF     = 64
KSIZE    = 3
STRIDE   = 1
PAD      = 1
FEAT_LEN = (N_MFCC + 2 * PAD - KSIZE) // STRIDE + 1     # == 32
S_OUT    = (S + 2 * PAD - KSIZE) // STRIDE + 1          # == 8
EPS      = 1e-5
SCALE    = 1.0 / math.sqrt(D_K)
NEG      = -1.0e9

BS   = B * S_OUT                      # 16   rows of the dense/FFN matmuls
P    = B * N_HEADS                    # 4    (batch, head) pairs
PS   = P * S_OUT                      # 32   rows of the attention matmuls
CIM  = KSIZE * KSIZE * FEAT_LEN + 1   # 289  im2col width (+1 bias column)
CIM2 = N_HEADS * CIM                  # 578  head-expanded im2col width
NOUT = 2 * D_K + D_MODEL              # 48   [Q | K | V@fc] columns


# ---- Pallas kernel: whole StartEncoderLayer forward, single invocation --------
def start_encoder_kernel(m2_ref, bias_ref, x2d_ref,
                         wbig_ref, sel_ref, esel_ref, w1_ref, w2_ref,
                         out_ref, attn_ref):
    # Fused conv + Q/K/V (+fc folded into V) projection: one MXU pass.
    qkv = jnp.dot(m2_ref[...], wbig_ref[...],
                  preferred_element_type=jnp.float32)            # (PS, 48)
    q   = qkv[:, 0:D_K]                                           # (PS, 8)  pair-stacked
    k   = qkv[:, D_K:2 * D_K]                                     # (PS, 8)  pair-stacked
    vfc = qkv[:, 2 * D_K:2 * D_K + D_MODEL]                       # (PS, 32) V @ fc, pair-stacked

    # Batched scaled-dot-product attention for all (b, h) pairs at once.
    # bias_ref already carries -1e9 on masked keys AND on cross-pair blocks.
    scores = jnp.dot(q, k.T, preferred_element_type=jnp.float32) * SCALE + bias_ref[...]
    scores = scores - jnp.max(scores, axis=-1, keepdims=True)
    e = jnp.exp(scores)                                           # off-pair blocks underflow to 0
    attn = e * pl.reciprocal(jnp.sum(e, axis=-1, keepdims=True), approx=False)  # (PS, PS)

    # Extract per-pair (8,8) attention blocks via a constant tiled-identity matmul
    # (off-diagonal attn is exactly 0, so the column-fold picks the diagonal block).
    attn_ref[...] = jnp.dot(attn, esel_ref[...], preferred_element_type=jnp.float32)  # (PS, 8)

    # Context + output projection + head sum:  SEL @ (attn @ (V@fc)).
    r = jnp.dot(attn, vfc, preferred_element_type=jnp.float32)    # (PS, 32)
    attn_out = jnp.dot(sel_ref[...], r, preferred_element_type=jnp.float32)  # (BS, 32)

    # Residual + LayerNorm(d_model) with fused one-pass statistics.
    y = attn_out + x2d_ref[...]
    s1 = jnp.sum(y, axis=-1, keepdims=True)
    s2 = jnp.sum(y * y, axis=-1, keepdims=True)
    mu = s1 * (1.0 / D_MODEL)
    var = s2 * (1.0 / D_MODEL) - mu * mu
    y = (y - mu) * jax.lax.rsqrt(var + EPS)

    # Position-wise FFN + residual + LayerNorm(d_model).
    h1 = jnp.maximum(jnp.dot(y, w1_ref[...], preferred_element_type=jnp.float32), 0.0)
    ffn = jnp.dot(h1, w2_ref[...], preferred_element_type=jnp.float32)
    z = ffn + y
    s1 = jnp.sum(z, axis=-1, keepdims=True)
    s2 = jnp.sum(z * z, axis=-1, keepdims=True)
    mu = s1 * (1.0 / D_MODEL)
    var = s2 * (1.0 / D_MODEL) - mu * mu
    out_ref[...] = (z - mu) * jax.lax.rsqrt(var + EPS)            # (BS, 32)


# ---- one-time weight packing (hoisted out of the per-call path) ---------------
def pack_weights(params):
    def fold_conv_into_proj(conv_w, conv_b, W):
        # Conv output c[b,i,j] = sum_t tap_t * window_t[b,i,j] + conv_b, then c @ W.
        # Folded weight rows: (t, j) -> tap_t * W[j, :] ; bias row -> conv_b * sum_j W[j, :]
        taps = conv_w.reshape(KSIZE * KSIZE)
        body = (taps[:, None, None] * W[None, :, :]).reshape(KSIZE * KSIZE * FEAT_LEN, W.shape[1])
        bias_row = (conv_b * jnp.sum(W, axis=0))[None, :]
        return jnp.concatenate([body, bias_row], axis=0)          # (CIM, n_out)

    wq_fold = fold_conv_into_proj(params["convq_w"], params["convq_b"], params["wq"])
    wk_fold = fold_conv_into_proj(params["convk_w"], params["convk_b"], params["wk"])
    wv_fold = fold_conv_into_proj(params["convv_w"], params["convv_b"], params["wv"])

    # Head-expanded packed weight: rows (h, im2col-col), cols [Q(8) | K(8) | V@fc(32)].
    blocks = []
    for h in range(N_HEADS):
        qc = wq_fold[:, h * D_K:(h + 1) * D_K]
        kc = wk_fold[:, h * D_K:(h + 1) * D_K]
        vc = wv_fold[:, h * D_V:(h + 1) * D_V] @ params["fc"][h * D_V:(h + 1) * D_V, :]
        blocks.append(jnp.concatenate([qc, kc, vc], axis=1))      # (CIM, 48)
    wbig = jnp.concatenate(blocks, axis=0)                        # (CIM2, 48)

    # SEL (BS, PS): sums the N_HEADS row-blocks of each batch back to (BS, d_model).
    sel_np = np.zeros((BS, PS), np.float32)
    for b in range(B):
        for h in range(N_HEADS):
            for i in range(S_OUT):
                sel_np[b * S_OUT + i, (b * N_HEADS + h) * S_OUT + i] = 1.0

    # ESEL (PS, S_OUT): tiled identity — folds the block-diagonal attn to per-pair tiles.
    esel_np = np.tile(np.eye(S_OUT, dtype=np.float32), (P, 1))

    return {
        "wbig": wbig,
        "sel": jnp.asarray(sel_np),
        "esel": jnp.asarray(esel_np),
        "w1": params["w1"],
        "w2": params["w2"],
    }


# ---- per-call wrapper (jitted) -------------------------------------------------
@jax.jit
def start_encoder_layer(x, attn_mask_bool, packed):
    """x: (B, S, N_MFCC) f32; attn_mask_bool: (B, S_OUT, S_OUT) bool (True = masked)."""
    # im2col of the 3x3 conv (shared by Q/K/V since input_Q==input_K==input_V), + bias column.
    xpad = jnp.pad(x, ((0, 0), (PAD, PAD), (PAD, PAD)))
    windows = [xpad[:, di:di + S_OUT, dj:dj + FEAT_LEN]
               for di in range(KSIZE) for dj in range(KSIZE)]     # 9 x (B, S_OUT, FEAT_LEN)
    ones = jnp.ones((B, S_OUT, 1), jnp.float32)
    m = jnp.concatenate(windows + [ones], axis=-1)                # (B, S_OUT, CIM)

    # Head-expanded im2col: row (b,h,i) holds the im2col row of (b,i) in the h-th
    # column slot and zeros elsewhere -> the packed matmul emits pair-stacked Q/K/V'.
    eye_h = jnp.eye(N_HEADS, dtype=jnp.float32)
    m2 = (m[:, None, :, None, :] * eye_h[None, :, None, :, None]).reshape(PS, CIM2)

    # Additive attention bias: in-block key mask + (-1e9) on all cross-(b,h) blocks.
    inblock = jnp.where(attn_mask_bool, jnp.float32(NEG), jnp.float32(0.0))   # (B, 8, 8)
    diag = jnp.repeat(inblock, N_HEADS, axis=0)                               # (P, 8, 8)
    eye_p = jnp.eye(P, dtype=bool)[:, None, :, None]                          # (P,1,P,1)
    bias_big = jnp.where(eye_p, diag[:, :, None, :], jnp.float32(NEG)).reshape(PS, PS)

    x2d = x.reshape(BS, D_MODEL)                                  # residual, flat

    vmem = pltpu.MemorySpace.VMEM
    out, attn_flat = pl.pallas_call(
        start_encoder_kernel,
        in_specs=[pl.BlockSpec(memory_space=vmem)] * 8,
        out_specs=(pl.BlockSpec(memory_space=vmem),
                   pl.BlockSpec(memory_space=vmem)),
        out_shape=(jax.ShapeDtypeStruct((BS, D_MODEL), jnp.float32),
                   jax.ShapeDtypeStruct((PS, S_OUT), jnp.float32)),
    )(m2, bias_big, x2d,
      packed["wbig"], packed["sel"], packed["esel"], packed["w1"], packed["w2"])

    return (out.reshape(B, S_OUT, D_MODEL),
            attn_flat.reshape(B, N_HEADS, S_OUT, S_OUT))


# ---- pure-JAX reference for correctness check ----------------------------------
def reference(x, attn_mask_bool, params):
    xpad = jnp.pad(x, ((0, 0), (PAD, PAD), (PAD, PAD)))

    def conv(w, b):
        acc = jnp.zeros((B, S_OUT, FEAT_LEN), jnp.float32)
        for di in range(KSIZE):
            for dj in range(KSIZE):
                acc = acc + w[di, dj] * xpad[:, di:di + S_OUT, dj:dj + FEAT_LEN]
        return acc + b

    cq = conv(params["convq_w"], params["convq_b"])
    ck = conv(params["convk_w"], params["convk_b"])
    cv = conv(params["convv_w"], params["convv_b"])

    Q = (cq @ params["wq"]).reshape(B, S_OUT, N_HEADS, D_K).transpose(0, 2, 1, 3)
    K = (ck @ params["wk"]).reshape(B, S_OUT, N_HEADS, D_K).transpose(0, 2, 1, 3)
    V = (cv @ params["wv"]).reshape(B, S_OUT, N_HEADS, D_V).transpose(0, 2, 1, 3)

    scores = jnp.einsum("bhqd,bhkd->bhqk", Q, K) * SCALE
    scores = jnp.where(attn_mask_bool[:, None, :, :], NEG, scores)
    attn = jax.nn.softmax(scores, axis=-1)
    ctx = jnp.einsum("bhqk,bhkd->bhqd", attn, V)
    ctx = ctx.transpose(0, 2, 1, 3).reshape(B, S_OUT, N_HEADS * D_V)
    o = ctx @ params["fc"] + x

    def ln(t):
        mu = jnp.mean(t, axis=-1, keepdims=True)
        var = jnp.mean((t - mu) ** 2, axis=-1, keepdims=True)
        return (t - mu) / jnp.sqrt(var + EPS)

    y = ln(o)
    ffn = jnp.maximum(y @ params["w1"], 0.0) @ params["w2"]
    return ln(ffn + y), attn


# ---- main -----------------------------------------------------------------------
if __name__ == "__main__":
    key = jax.random.PRNGKey(0)
    ks = jax.random.split(key, 14)

    # Deterministic synthetic parameters.  Linear weights are stored (in, out),
    # i.e. already transposed relative to PyTorch's (out, in) convention.
    params = {
        "convq_w": jax.random.normal(ks[0], (KSIZE, KSIZE), jnp.float32) * 0.2,
        "convq_b": jax.random.normal(ks[1], (), jnp.float32) * 0.1,
        "convk_w": jax.random.normal(ks[2], (KSIZE, KSIZE), jnp.float32) * 0.2,
        "convk_b": jax.random.normal(ks[3], (), jnp.float32) * 0.1,
        "convv_w": jax.random.normal(ks[4], (KSIZE, KSIZE), jnp.float32) * 0.2,
        "convv_b": jax.random.normal(ks[5], (), jnp.float32) * 0.1,
        "wq": jax.random.normal(ks[6], (FEAT_LEN, N_HEADS * D_K), jnp.float32) * 0.1,
        "wk": jax.random.normal(ks[7], (FEAT_LEN, N_HEADS * D_K), jnp.float32) * 0.1,
        "wv": jax.random.normal(ks[8], (FEAT_LEN, N_HEADS * D_V), jnp.float32) * 0.1,
        "fc": jax.random.normal(ks[9], (N_HEADS * D_V, D_MODEL), jnp.float32) * 0.1,
        "w1": jax.random.normal(ks[10], (D_MODEL, D_FF), jnp.float32) * 0.1,
        "w2": jax.random.normal(ks[11], (D_FF, D_MODEL), jnp.float32) * 0.1,
    }

    x = jax.random.normal(ks[12], (B, S, N_MFCC), jnp.float32)

    # Key-padding style attention mask (True = masked), deterministic.
    lens = jnp.array([S_OUT, S_OUT - 2], dtype=jnp.int32)
    key_ids = jax.lax.broadcasted_iota(jnp.int32, (B, S_OUT, S_OUT), 2)
    attn_mask = key_ids >= lens[:, None, None]

    # Hoisted, one-time weight packing (not part of the per-call hot path).
    packed = jax.tree_util.tree_map(jax.block_until_ready, pack_weights(params))

    enc_out, attn = jax.block_until_ready(start_encoder_layer(x, attn_mask, packed))
    ref_out, ref_attn = reference(x, attn_mask, params)

    np.testing.assert_allclose(np.asarray(enc_out), np.asarray(ref_out),
                               rtol=1e-4, atol=1e-4)
    np.testing.assert_allclose(np.asarray(attn), np.asarray(ref_attn),
                               rtol=1e-4, atol=1e-4)
    print("KERNEL_OK")
</pallas_src>

<mosaic_0001>
module attributes {stable_mosaic.version = 11 : i64} {
  func.func @start_encoder_kernel(%arg0: memref<32x578xf32, #tpu.memory_space<vmem>>, %arg1: memref<32x32xf32, #tpu.memory_space<vmem>>, %arg2: memref<16x32xf32, #tpu.memory_space<vmem>>, %arg3: memref<578x48xf32, #tpu.memory_space<vmem>>, %arg4: memref<16x32xf32, #tpu.memory_space<vmem>>, %arg5: memref<32x8xf32, #tpu.memory_space<vmem>>, %arg6: memref<32x64xf32, #tpu.memory_space<vmem>>, %arg7: memref<64x32xf32, #tpu.memory_space<vmem>>, %arg8: memref<16x32xf32, #tpu.memory_space<vmem>>, %arg9: memref<32x8xf32, #tpu.memory_space<vmem>>) attributes {dimension_semantics = [], scalar_prefetch = 0 : i64, scratch_operands = 0 : i64, tpu.core_type = #tpu.core_type<tc>} {
    %c0 = arith.constant 0 : index
    %c0_0 = arith.constant 0 : index
    %0 = vector.load %arg0[%c0, %c0_0] : memref<32x578xf32, #tpu.memory_space<vmem>>, vector<32x578xf32>
    %c0_1 = arith.constant 0 : index
    %c0_2 = arith.constant 0 : index
    %1 = vector.load %arg3[%c0_1, %c0_2] : memref<578x48xf32, #tpu.memory_space<vmem>>, vector<578x48xf32>
    %cst = arith.constant dense<0.000000e+00> : vector<32x48xf32>
    %2 = tpu.matmul %0, %1, %cst {dimension_numbers = #tpu.dot_dimension_numbers<[1], [0], [0], [1], [0, 0, 1, 1], [], []>} : vector<32x578xf32>, vector<578x48xf32>, vector<32x48xf32> -> vector<32x48xf32>
    %3 = vector.extract_strided_slice %2 {offsets = [0, 0], sizes = [32, 8], strides = [1, 1]} : vector<32x48xf32> to vector<32x8xf32>
    %4 = vector.extract_strided_slice %2 {offsets = [0, 8], sizes = [32, 8], strides = [1, 1]} : vector<32x48xf32> to vector<32x8xf32>
    %5 = vector.extract_strided_slice %2 {offsets = [0, 16], sizes = [32, 32], strides = [1, 1]} : vector<32x48xf32> to vector<32x32xf32>
    %6 = tpu.transpose %4, [1, 0] : vector<32x8xf32> -> vector<8x32xf32>
    %cst_3 = arith.constant dense<0.000000e+00> : vector<32x32xf32>
    %7 = tpu.matmul %3, %6, %cst_3 {dimension_numbers = #tpu.dot_dimension_numbers<[1], [0], [0], [1], [0, 0, 1, 1], [], []>} : vector<32x8xf32>, vector<8x32xf32>, vector<32x32xf32> -> vector<32x32xf32>
    %cst_4 = arith.constant 0.353553385 : f32
    %8 = vector.broadcast %cst_4 : f32 to vector<32x32xf32>
    %9 = arith.mulf %7, %8 : vector<32x32xf32>
    %c0_5 = arith.constant 0 : index
    %c0_6 = arith.constant 0 : index
    %10 = vector.load %arg1[%c0_5, %c0_6] : memref<32x32xf32, #tpu.memory_space<vmem>>, vector<32x32xf32>
    %11 = arith.addf %9, %10 : vector<32x32xf32>
    %cst_7 = arith.constant dense<0xFF800000> : vector<32xf32>
    %12 = vector.multi_reduction <maximumf>, %11, %cst_7 [1] : vector<32x32xf32> to vector<32xf32>
    %13 = vector.shape_cast %12 : vector<32xf32> to vector<32x1xf32>
    %14 = vector.broadcast %13 : vector<32x1xf32> to vector<32x32xf32>
    %15 = arith.subf %11, %14 : vector<32x32xf32>
    %16 = math.exp %15 : vector<32x32xf32>
    %cst_8 = arith.constant dense<0.000000e+00> : vector<32xf32>
    %17 = vector.multi_reduction <add>, %16, %cst_8 [1] : vector<32x32xf32> to vector<32xf32>
    %18 = vector.shape_cast %17 : vector<32xf32> to vector<32x1xf32>
    %19 = tpu.reciprocal %18 : vector<32x1xf32> -> vector<32x1xf32>
    %20 = vector.broadcast %19 : vector<32x1xf32> to vector<32x32xf32>
    %21 = arith.mulf %16, %20 : vector<32x32xf32>
    %c0_9 = arith.constant 0 : index
    %c0_10 = arith.constant 0 : index
    %22 = vector.load %arg5[%c0_9, %c0_10] : memref<32x8xf32, #tpu.memory_space<vmem>>, vector<32x8xf32>
    %cst_11 = arith.constant dense<0.000000e+00> : vector<32x8xf32>
    %23 = tpu.matmul %21, %22, %cst_11 {dimension_numbers = #tpu.dot_dimension_numbers<[1], [0], [0], [1], [0, 0, 1, 1], [], []>} : vector<32x32xf32>, vector<32x8xf32>, vector<32x8xf32> -> vector<32x8xf32>
    %c0_12 = arith.constant 0 : index
    %c0_13 = arith.constant 0 : index
    %24 = vector.load %arg9[%c0_12, %c0_13] : memref<32x8xf32, #tpu.memory_space<vmem>>, vector<32x8xf32>
    tpu.vector_store %arg9[%c0_12, %c0_13], %23 {strides = array<i32>} : memref<32x8xf32, #tpu.memory_space<vmem>>, vector<32x8xf32>,
    %cst_14 = arith.constant dense<0.000000e+00> : vector<32x32xf32>
    %25 = tpu.matmul %21, %5, %cst_14 {dimension_numbers = #tpu.dot_dimension_numbers<[1], [0], [0], [1], [0, 0, 1, 1], [], []>} : vector<32x32xf32>, vector<32x32xf32>, vector<32x32xf32> -> vector<32x32xf32>
    %c0_15 = arith.constant 0 : index
    %c0_16 = arith.constant 0 : index
    %26 = vector.load %arg4[%c0_15, %c0_16] : memref<16x32xf32, #tpu.memory_space<vmem>>, vector<16x32xf32>
    %cst_17 = arith.constant dense<0.000000e+00> : vector<16x32xf32>
    %27 = tpu.matmul %26, %25, %cst_17 {dimension_numbers = #tpu.dot_dimension_numbers<[1], [0], [0], [1], [0, 0, 1, 1], [], []>} : vector<16x32xf32>, vector<32x32xf32>, vector<16x32xf32> -> vector<16x32xf32>
    %c0_18 = arith.constant 0 : index
    %c0_19 = arith.constant 0 : index
    %28 = vector.load %arg2[%c0_18, %c0_19] : memref<16x32xf32, #tpu.memory_space<vmem>>, vector<16x32xf32>
    %29 = arith.addf %27, %28 : vector<16x32xf32>
    %cst_20 = arith.constant dense<0.000000e+00> : vector<16xf32>
    %30 = vector.multi_reduction <add>, %29, %cst_20 [1] : vector<16x32xf32> to vector<16xf32>
    %31 = vector.shape_cast %30 : vector<16xf32> to vector<16x1xf32>
    %32 = arith.mulf %29, %29 : vector<16x32xf32>
    %cst_21 = arith.constant dense<0.000000e+00> : vector<16xf32>
    %33 = vector.multi_reduction <add>, %32, %cst_21 [1] : vector<16x32xf32> to vector<16xf32>
    %34 = vector.shape_cast %33 : vector<16xf32> to vector<16x1xf32>
    %cst_22 = arith.constant 3.125000e-02 : f32
    %35 = vector.broadcast %cst_22 : f32 to vector<16x1xf32>
    %36 = arith.mulf %31, %35 : vector<16x1xf32>
    %cst_23 = arith.constant 3.125000e-02 : f32
    %37 = vector.broadcast %cst_23 : f32 to vector<16x1xf32>
    %38 = arith.mulf %34, %37 : vector<16x1xf32>
    %39 = arith.mulf %36, %36 : vector<16x1xf32>
    %40 = arith.subf %38, %39 : vector<16x1xf32>
    %41 = vector.broadcast %36 : vector<16x1xf32> to vector<16x32xf32>
    %42 = arith.subf %29, %41 : vector<16x32xf32>
    %cst_24 = arith.constant 9.99999974E-6 : f32
    %43 = vector.broadcast %cst_24 : f32 to vector<16x1xf32>
    %44 = arith.addf %40, %43 : vector<16x1xf32>
    %45 = math.rsqrt %44 : vector<16x1xf32>
    %46 = vector.broadcast %45 : vector<16x1xf32> to vector<16x32xf32>
    %47 = arith.mulf %42, %46 : vector<16x32xf32>
    %c0_25 = arith.constant 0 : index
    %c0_26 = arith.constant 0 : index
    %48 = vector.load %arg6[%c0_25, %c0_26] : memref<32x64xf32, #tpu.memory_space<vmem>>, vector<32x64xf32>
    %cst_27 = arith.constant dense<0.000000e+00> : vector<16x64xf32>
    %49 = tpu.matmul %47, %48, %cst_27 {dimension_numbers = #tpu.dot_dimension_numbers<[1], [0], [0], [1], [0, 0, 1, 1], [], []>} : vector<16x32xf32>, vector<32x64xf32>, vector<16x64xf32> -> vector<16x64xf32>
    %cst_28 = arith.constant 0.000000e+00 : f32
    %50 = vector.broadcast %cst_28 : f32 to vector<16x64xf32>
    %51 = arith.maximumf %49, %50 : vector<16x64xf32>
    %c0_29 = arith.constant 0 : index
    %c0_30 = arith.constant 0 : index
    %52 = vector.load %arg7[%c0_29, %c0_30] : memref<64x32xf32, #tpu.memory_space<vmem>>, vector<64x32xf32>
    %cst_31 = arith.constant dense<0.000000e+00> : vector<16x32xf32>
    %53 = tpu.matmul %51, %52, %cst_31 {dimension_numbers = #tpu.dot_dimension_numbers<[1], [0], [0], [1], [0, 0, 1, 1], [], []>} : vector<16x64xf32>, vector<64x32xf32>, vector<16x32xf32> -> vector<16x32xf32>
    %54 = arith.addf %53, %47 : vector<16x32xf32>
    %cst_32 = arith.constant dense<0.000000e+00> : vector<16xf32>
    %55 = vector.multi_reduction <add>, %54, %cst_32 [1] : vector<16x32xf32> to vector<16xf32>
    %56 = vector.shape_cast %55 : vector<16xf32> to vector<16x1xf32>
    %57 = arith.mulf %54, %54 : vector<16x32xf32>
    %cst_33 = arith.constant dense<0.000000e+00> : vector<16xf32>
    %58 = vector.multi_reduction <add>, %57, %cst_33 [1] : vector<16x32xf32> to vector<16xf32>
    %59 = vector.shape_cast %58 : vector<16xf32> to vector<16x1xf32>
    %cst_34 = arith.constant 3.125000e-02 : f32
    %60 = vector.broadcast %cst_34 : f32 to vector<16x1xf32>
    %61 = arith.mulf %56, %60 : vector<16x1xf32>
    %cst_35 = arith.constant 3.125000e-02 : f32
    %62 = vector.broadcast %cst_35 : f32 to vector<16x1xf32>
    %63 = arith.mulf %59, %62 : vector<16x1xf32>
    %64 = arith.mulf %61, %61 : vector<16x1xf32>
    %65 = arith.subf %63, %64 : vector<16x1xf32>
    %66 = vector.broadcast %61 : vector<16x1xf32> to vector<16x32xf32>
    %67 = arith.subf %54, %66 : vector<16x32xf32>
    %cst_36 = arith.constant 9.99999974E-6 : f32
    %68 = vector.broadcast %cst_36 : f32 to vector<16x1xf32>
    %69 = arith.addf %65, %68 : vector<16x1xf32>
    %70 = math.rsqrt %69 : vector<16x1xf32>
    %71 = vector.broadcast %70 : vector<16x1xf32> to vector<16x32xf32>
    %72 = arith.mulf %67, %71 : vector<16x32xf32>
    %c0_37 = arith.constant 0 : index
    %c0_38 = arith.constant 0 : index
    %73 = vector.load %arg8[%c0_37, %c0_38] : memref<16x32xf32, #tpu.memory_space<vmem>>, vector<16x32xf32>
    tpu.vector_store %arg8[%c0_37, %c0_38], %72 {strides = array<i32>} : memref<16x32xf32, #tpu.memory_space<vmem>>, vector<16x32xf32>,
    return
  }
}

</mosaic_0001>

<bundles_post_ra>
// kernel: start_encoder_layer.1
= control target key start
LH: loop header
LB: loop body
LE: loop exit
PB: predicated region body
PF: predicated region fallthrough
CT: control target
= control target key end

     0   :  { %15 = vsyncpa [#allocation3], 0  ;;  %s1402_s0 = inlined_call_operand.vmem [shape: f32[32,578], index: 0, kind: input, shape index: {}]   ;;  %s1403_s1 = inlined_call_operand.vmem [shape: f32[32,32], index: 1, kind: input, shape index: {}]   ;;  %s1404_s2 = inlined_call_operand.vmem [shape: f32[16,32], index: 2, kind: input, shape index: {}]   ;;  %s1405_s3 = inlined_call_operand.vmem [shape: f32[578,48], index: 3, kind: input, shape index: {}]   ;;  %s1406_s4 = inlined_call_operand.vmem [shape: f32[16,32], index: 4, kind: input, shape index: {}]   ;;  %s1407_s5 = inlined_call_operand.vmem [shape: f32[32,8], index: 5, kind: input, shape index: {}]   ;;  %s1408_s6 = inlined_call_operand.vmem [shape: f32[32,64], index: 6, kind: input, shape index: {}]   ;;  %s1409_s7 = inlined_call_operand.vmem [shape: f32[64,32], index: 7, kind: input, shape index: {}]   ;;  %s1410_s8 = inlined_call_operand.hbm [shape: f32[16,32], index: 8, kind: output, shape index: {0}]   ;;  %s1411_s9 = inlined_call_operand.hbm [shape: f32[32,8], index: 9, kind: output, shape index: {1}]  }
   0x1   :  { %v68_v0 = vld [vmem:[%s1405_s3 + $0x78] sm:$0xff]  ;;  %v67_v3 = vld [vmem:[%s1405_s3 + $0x70] sm:$0xff]  ;;  %v66_v7 = vld [vmem:[%s1405_s3 + $0x68] sm:$0xff] }
   0x2   :  { %v84_v1 = vld [vmem:[%s1405_s3 + $0xf8] sm:$0xff]  ;;  %143 = vmatpush.msra.mxu0 %v68_v0  ;;  %v83_v4 = vld [vmem:[%s1405_s3 + $0xf0] sm:$0xff]  ;;  %v82_v8 = vld [vmem:[%s1405_s3 + $0xe8] sm:$0xff] }
   0x3   :  { %v100_v2 = vld [vmem:[%s1405_s3 + $0x178] sm:$0xff]  ;;  %172 = vmatpush.msra.mxu1 %v84_v1  ;;  %v99_v5 = vld [vmem:[%s1405_s3 + $0x170] sm:$0xff]  ;;  %v98_v9 = vld [vmem:[%s1405_s3 + $0x168] sm:$0xff] }
   0x4   :  { %201 = vmatpush.msra.mxu2 %v100_v2  ;;  %v116_v6 = vld [vmem:[%s1405_s3 + $0x1f8] sm:$0xff]  ;;  %144 = vmatpush.msra.mxu0 %v67_v3  ;;  %v115_v10 = vld [vmem:[%s1405_s3 + $0x1f0] sm:$0xff]  ;;  %v65_v11 = vld [vmem:[%s1405_s3 + $0x60] sm:$0xff] }
   0x5   :  { %173 = vmatpush.msra.mxu1 %v83_v4  ;;  %230 = vmatpush.msra.mxu3 %v116_v6  ;;  %v81_v12 = vld [vmem:[%s1405_s3 + $0xe0] sm:$0xff]  ;;  %v114_v14 = vld [vmem:[%s1405_s3 + $0x1e8] sm:$0xff]  ;;  %v64_v15 = vld [vmem:[%s1405_s3 + $0x58] sm:$0xff] }
   0x6   :  { %202 = vmatpush.msra.mxu2 %v99_v5  ;;  %145 = vmatpush.msra.mxu0 %v66_v7  ;;  %v97_v13 = vld [vmem:[%s1405_s3 + $0x160] sm:$0xff]  ;;  %v80_v16 = vld [vmem:[%s1405_s3 + $0xd8] sm:$0xff]  ;;  %v63_v19 = vld [vmem:[%s1405_s3 + $0x50] sm:$0xff] }
   0x7   :  { %174 = vmatpush.msra.mxu1 %v82_v8  ;;  %231 = vmatpush.msra.mxu3 %v115_v10  ;;  %v96_v17 = vld [vmem:[%s1405_s3 + $0x158] sm:$0xff]  ;;  %v113_v18 = vld [vmem:[%s1405_s3 + $0x1e0] sm:$0xff]  ;;  %v79_v20 = vld [vmem:[%s1405_s3 + $0xd0] sm:$0xff] }
   0x8   :  { %203 = vmatpush.msra.mxu2 %v98_v9  ;;  %146 = vmatpush.msra.mxu0 %v65_v11  ;;  %v95_v21 = vld [vmem:[%s1405_s3 + $0x150] sm:$0xff]  ;;  %v112_v22 = vld [vmem:[%s1405_s3 + $0x1d8] sm:$0xff]  ;;  %v62_v23 = vld [vmem:[%s1405_s3 + $0x48] sm:$0xff] }
   0x9   :  { %175 = vmatpush.msra.mxu1 %v81_v12  ;;  %232 = vmatpush.msra.mxu3 %v114_v14  ;;  %v78_v24 = vld [vmem:[%s1405_s3 + $0xc8] sm:$0xff]  ;;  %v111_v26 = vld [vmem:[%s1405_s3 + $0x1d0] sm:$0xff]  ;;  %v61_v27 = vld [vmem:[%s1405_s3 + $0x40] sm:$0xff] }
   0xa   :  { %204 = vmatpush.msra.mxu2 %v97_v13  ;;  %147 = vmatpush.msra.mxu0 %v64_v15  ;;  %v94_v25 = vld [vmem:[%s1405_s3 + $0x148] sm:$0xff]  ;;  %v77_v28 = vld [vmem:[%s1405_s3 + $0xc0] sm:$0xff]  ;;  %v60_v31 = vld [vmem:[%s1405_s3 + $0x38] sm:$0xff] }
   0xb   :  { %176 = vmatpush.msra.mxu1 %v80_v16  ;;  %233 = vmatpush.msra.mxu3 %v113_v18  ;;  %v93_v29 = vld [vmem:[%s1405_s3 + $0x140] sm:$0xff]  ;;  %v110_v30 = vld [vmem:[%s1405_s3 + $0x1c8] sm:$0xff]  ;;  %v76_v32 = vld [vmem:[%s1405_s3 + $0xb8] sm:$0xff] }
   0xc   :  { %205 = vmatpush.msra.mxu2 %v96_v17  ;;  %148 = vmatpush.msra.mxu0 %v63_v19  ;;  %v92_v33 = vld [vmem:[%s1405_s3 + $0x138] sm:$0xff]  ;;  %v109_v34 = vld [vmem:[%s1405_s3 + $0x1c0] sm:$0xff]  ;;  %v59_v35 = vld [vmem:[%s1405_s3 + $0x30] sm:$0xff] }
   0xd   :  { %177 = vmatpush.msra.mxu1 %v79_v20  ;;  %234 = vmatpush.msra.mxu3 %v112_v22  ;;  %v75_v36 = vld [vmem:[%s1405_s3 + $0xb0] sm:$0xff]  ;;  %v108_v38 = vld [vmem:[%s1405_s3 + $0x1b8] sm:$0xff]  ;;  %v58_v39 = vld [vmem:[%s1405_s3 + $0x28] sm:$0xff] }
   0xe   :  { %206 = vmatpush.msra.mxu2 %v95_v21  ;;  %149 = vmatpush.msra.mxu0 %v62_v23  ;;  %v91_v37 = vld [vmem:[%s1405_s3 + $0x130] sm:$0xff]  ;;  %v74_v40 = vld [vmem:[%s1405_s3 + $0xa8] sm:$0xff]  ;;  %v57_v43 = vld [vmem:[%s1405_s3 + $0x20] sm:$0xff] }
   0xf   :  { %178 = vmatpush.msra.mxu1 %v78_v24  ;;  %235 = vmatpush.msra.mxu3 %v111_v26  ;;  %v90_v41 = vld [vmem:[%s1405_s3 + $0x128] sm:$0xff]  ;;  %v107_v42 = vld [vmem:[%s1405_s3 + $0x1b0] sm:$0xff]  ;;  %v73_v44 = vld [vmem:[%s1405_s3 + $0xa0] sm:$0xff] }
  0x10   :  { %207 = vmatpush.msra.mxu2 %v94_v25  ;;  %150 = vmatpush.msra.mxu0 %v61_v27  ;;  %v89_v45 = vld [vmem:[%s1405_s3 + $0x120] sm:$0xff]  ;;  %v106_v46 = vld [vmem:[%s1405_s3 + $0x1a8] sm:$0xff]  ;;  %v56_v47 = vld [vmem:[%s1405_s3 + $0x18] sm:$0xff] }
  0x11   :  { %179 = vmatpush.msra.mxu1 %v77_v28  ;;  %236 = vmatpush.msra.mxu3 %v110_v30  ;;  %v72_v48 = vld [vmem:[%s1405_s3 + $0x98] sm:$0xff]  ;;  %v105_v50 = vld [vmem:[%s1405_s3 + $0x1a0] sm:$0xff]  ;;  %v55_v51 = vld [vmem:[%s1405_s3 + $0x10] sm:$0xff] }
  0x12   :  { %208 = vmatpush.msra.mxu2 %v93_v29  ;;  %151 = vmatpush.msra.mxu0 %v60_v31  ;;  %v88_v49 = vld [vmem:[%s1405_s3 + $0x118] sm:$0xff]  ;;  %v71_v52 = vld [vmem:[%s1405_s3 + $0x90] sm:$0xff]  ;;  %v54_v55 = vld [vmem:[%s1405_s3 + $0x8] sm:$0xff] }
  0x13   :  { %180 = vmatpush.msra.mxu1 %v76_v32  ;;  %237 = vmatpush.msra.mxu3 %v109_v34  ;;  %v87_v53 = vld [vmem:[%s1405_s3 + $0x110] sm:$0xff]  ;;  %v104_v54 = vld [vmem:[%s1405_s3 + $0x198] sm:$0xff]  ;;  %v70_v56 = vld [vmem:[%s1405_s3 + $0x88] sm:$0xff] }
  0x14   :  { %209 = vmatpush.msra.mxu2 %v92_v33  ;;  %152 = vmatpush.msra.mxu0 %v59_v35  ;;  %v86_v57 = vld [vmem:[%s1405_s3 + $0x108] sm:$0xff]  ;;  %v103_v58 = vld [vmem:[%s1405_s3 + $0x190] sm:$0xff]  ;;  %v53_v59 = vld [vmem:[%s1405_s3] sm:$0xff] }
  0x15   :  { %181 = vmatpush.msra.mxu1 %v75_v36  ;;  %238 = vmatpush.msra.mxu3 %v108_v38  ;;  %v69_v60 = vld [vmem:[%s1405_s3 + $0x80] sm:$0xff]  ;;  %v102_v62 = vld [vmem:[%s1405_s3 + $0x188] sm:$0xff] }
  0x16   :  { %210 = vmatpush.msra.mxu2 %v91_v37  ;;  %153 = vmatpush.msra.mxu0 %v58_v39  ;;  %v85_v61 = vld [vmem:[%s1405_s3 + $0x100] sm:$0xff]  ;;  %v34_v0 = vld [vmem:[%s1402_s0 + $0x8] sm:$0xff] }
  0x17   :  { %182 = vmatpush.msra.mxu1 %v74_v40  ;;  %239 = vmatpush.msra.mxu3 %v107_v42  ;;  %v33_v63 = vld [vmem:[%s1402_s0] sm:$0xff] }
  0x18   :  { %211 = vmatpush.msra.mxu2 %v90_v41  ;;  %154 = vmatpush.msra.mxu0 %v57_v43 }
  0x19   :  { %183 = vmatpush.msra.mxu1 %v73_v44  ;;  %240 = vmatpush.msra.mxu3 %v106_v46 }
  0x1a   :  { %212 = vmatpush.msra.mxu2 %v89_v45  ;;  %155 = vmatpush.msra.mxu0 %v56_v47 }
  0x1b   :  { %184 = vmatpush.msra.mxu1 %v72_v48  ;;  %241 = vmatpush.msra.mxu3 %v105_v50 }
  0x1c   :  { %213 = vmatpush.msra.mxu2 %v88_v49  ;;  %156 = vmatpush.msra.mxu0 %v55_v51 }
  0x1d   :  { %185 = vmatpush.msra.mxu1 %v71_v52  ;;  %242 = vmatpush.msra.mxu3 %v104_v54 }
  0x1e   :  { %214 = vmatpush.msra.mxu2 %v87_v53  ;;  %157 = vmatpush.msra.mxu0 %v54_v55 }
  0x1f   :  { %186 = vmatpush.msra.mxu1 %v70_v56  ;;  %243 = vmatpush.msra.mxu3 %v103_v58 }
  0x20   :  { %215 = vmatpush.msra.mxu2 %v86_v57 }
  0x21   :  { %16 = vsyncpa [#allocation5], 0  ;;  %158 = vmatpush.msra.mxu0 %v53_v59  ;;  %187 = vmatpush.msra.mxu1 %v69_v60  ;;  %v35_v1 = vld [vmem:[%s1402_s0 + $0x10] sm:$0xff]  ;;  %v101_v2 = vld [vmem:[%s1405_s3 + $0x180] sm:$0xff]  ;;  %vm139_vm0 = vcmask 1041408   ;;  %vm126_vm1 = vcmask 539648  }
  0x22   :  { %216 = vmatpush.msra.mxu2 %v85_v61  ;;  %244 = vmatpush.msra.mxu3 %v102_v62  ;;  %v36_v3 = vld [vmem:[%s1402_s0 + $0x18] sm:$0xff]  ;;  %v125_v4 = vld [vmem:[%s1405_s3 + $0x240] sm:$0x3]  ;;  %v123_v6 = vld [vmem:[%s1405_s3 + $0x230] sm:$0xff]  ;;  %vm300_vm2 = vcmask 64512   ;;  %vm358_vm3 = vcmask 261120  }
  0x23   :  { %159 = vmatmul.f32.vlgmr.msra.gmra.mxu0 %v33_v63  ;;  %188 = vmatmul.f32.vlgmr.msra.gmra.mxu1 %v34_v0  ;;  %v124_v5 = vld [vmem:[%s1405_s3 + $0x238] sm:$0xff]  ;;  %v38_v7 = vld [vmem:[%s1402_s0 + $0x28] sm:$0xff]  ;;  %v39_v8 = vld [vmem:[%s1402_s0 + $0x30] sm:$0xff]  ;;  %s909_s13 = smov 112   ;;  %s755_s29 = sshll.u32 %s1410_s8, 4  ;;  %s756_s29 = int_to_ptr.hbm [resolvable:$true] %s755_s29 }
  0x24   :  { %217 = vmatmul.f32.vlgmr.msra.gmra.mxu2 %v35_v1  ;;  %245 = vmatpush.msra.mxu3 %v101_v2  ;;  %v40_v9 = vld [vmem:[%s1402_s0 + $0x38] sm:$0xff]  ;;  %v122_v10 = vld [vmem:[%s1405_s3 + $0x228] sm:$0xff]  ;;  %v41_v11 = vld [vmem:[%s1402_s0 + $0x40] sm:$0xff] }
  0x25   :  { %246 = vmatmul.f32.vlgmr.msra.gmra.mxu3 %v36_v3  ;;  %785 = vmatpush.msk.msrb.mxu0 %vm139_vm0, %v125_v4  ;;  %v121_v12 = vld [vmem:[%s1405_s3 + $0x220] sm:$0xff]  ;;  %v120_v13 = vld [vmem:[%s1405_s3 + $0x218] sm:$0xff]  ;;  %v119_v14 = vld [vmem:[%s1405_s3 + $0x210] sm:$0xff] }
  0x26   :  { %v43_v15 = vld [vmem:[%s1402_s0 + $0x50] sm:$0xff]  ;;  %v44_v16 = vld [vmem:[%s1402_s0 + $0x58] sm:$0xff]  ;;  %v45_v17 = vld [vmem:[%s1402_s0 + $0x60] sm:$0xff] }
  0x27   :  { %267 = vmatpush.msrb.mxu0 %v124_v5  ;;  %v118_v18 = vld [vmem:[%s1405_s3 + $0x208] sm:$0xff]  ;;  %v117_v20 = vld [vmem:[%s1405_s3 + $0x200] sm:$0xff]  ;;  %v48_v21 = vld [vmem:[%s1402_s0 + $0x78] sm:$0xff] }
  0x28   :  { %v46_v19 = vld [vmem:[%s1402_s0 + $0x68] sm:$0xff]  ;;  %v49_v22 = vld [vmem:[%s1402_s0 + $0x80] sm:$0xff]  ;;  %v51_v24 = vld [vmem:[%s1402_s0 + $0x90] sm:$0xff] }
  0x29   :  { %268 = vmatpush.msrb.mxu0 %v123_v6  ;;  %v50_v23 = vld [vmem:[%s1402_s0 + $0x88] sm:$0xff]  ;;  %v37_v25 = vld [vmem:[%s1402_s0 + $0x20] sm:$0xff]  ;;  %v47_v27 = vld [vmem:[%s1402_s0 + $0x70] sm:$0xff] }
  0x2a   :  { %v42_v26 = vld [vmem:[%s1402_s0 + $0x48] sm:$0xff]  ;;  %v52_v28 = vld [vmem:[%s1402_s0 + $0x98] sm:$0xff]  ;;  %s908_s0 = smov 120   ;;  %v350_v6 = vld [vmem:[%s1403_s1] sm:$0xff] }
  0x2b   :  { %162 = vmatmul.f32.gmra.mxu0 %v38_v7  ;;  %191 = vmatmul.f32.gmra.mxu1 %v39_v8 }
  0x2c   :  { %220 = vmatmul.f32.gmra.mxu2 %v40_v9  ;;  %269 = vmatpush.msrb.mxu0 %v122_v10 }
  0x2d   :  { %249 = vmatmul.f32.gmra.mxu3 %v41_v11  ;;  %v351_v11 = vld [vmem:[%s1403_s1 + $0x8] sm:$0xff] }
  0x2e   :  { %270 = vmatpush.msrb.mxu0 %v121_v12 }
  0x30   :  { %271 = vmatpush.msrb.mxu0 %v120_v13 }
  0x32   :  { %272 = vmatpush.msrb.mxu0 %v119_v14 }
  0x33   :  { %165 = vmatmul.f32.gmra.mxu0 %v43_v15  ;;  %194 = vmatmul.f32.gmra.mxu1 %v44_v16  ;;  %v352_v16 = vld [vmem:[%s1403_s1 + $0x10] sm:$0xff] }
  0x34   :  { %223 = vmatmul.f32.gmra.mxu2 %v45_v17  ;;  %273 = vmatpush.msrb.mxu0 %v118_v18 }
  0x35   :  { %252 = vmatmul.f32.gmra.mxu3 %v46_v19 }
  0x36   :  { %274 = vmatpush.msrb.mxu0 %v117_v20 }
  0x3b   :  { %168 = vmatmul.f32.gmra.mxu0 %v48_v21  ;;  %197 = vmatmul.f32.gmra.mxu1 %v49_v22  ;;  %v353_v21 = vld [vmem:[%s1403_s1 + $0x18] sm:$0xff] }
  0x3c   :  { %226 = vmatmul.f32.gmra.mxu2 %v50_v23 }
  0x3d   :  { %255 = vmatmul.f32.gmra.mxu3 %v51_v24 }
  0x43   :  { %786 = vmatmul.msk.f32.vlgmr.msrb.gmra.mxu0 %vm126_vm1, %v37_v25 }
  0x4b   :  { %787 = vmatmul.msk.f32.gmra.mxu0 %vm126_vm1, %v42_v26 }
  0x53   :  { %788 = vmatmul.msk.f32.gmra.mxu0 %vm126_vm1, %v47_v27 }
  0x5b   :  { %789 = vmatmul.msk.f32.gmra.mxu0 %vm126_vm1, %v52_v28 }
  0xa0   :  { %v160_v29 = vpop.f32.mrf.mxu0  ;;  %v189_v31 = vpop.f32.mrf.mxu1 }
  0xa1   :  { %v190_v46 = vadd.f32 %v189_v31, %v160_v29 }
  0xa7   :  { %v218_v33 = vpop.f32.mrf.mxu2 }
  0xa8   :  { %v163_v30 = vpop.f32.mrf.mxu0  ;;  %v247_v34 = vpop.f32.mrf.mxu3  ;;  %v219_v49 = vadd.f32 %v218_v33, %v190_v46 }
  0xa9   :  { %v192_v36 = vpop.f32.mrf.mxu1 }
  0xaa   :  { %v193_v40 = vadd.f32 %v192_v36, %v163_v30  ;;  %v248_v51 = vadd.f32 %v247_v34, %v219_v49 }
  0xaf   :  { %v221_v37 = vpop.f32.mrf.mxu2 }
  0xb0   :  { %v166_v32 = vpop.f32.mrf.mxu0  ;;  %v250_v38 = vpop.f32.mrf.mxu3  ;;  %v222_v41 = vadd.f32 %v221_v37, %v193_v40 }
  0xb1   :  { %v195_v42 = vpop.f32.mrf.mxu1 }
  0xb2   :  { %v251_v44 = vadd.f32 %v250_v38, %v222_v41  ;;  %v196_v60 = vadd.f32 %v195_v42, %v166_v32 }
  0xb7   :  { %v224_v43 = vpop.f32.mrf.mxu2 }
  0xb8   :  { %v169_v35 = vpop.f32.mrf.mxu0  ;;  %v253_v48 = vpop.f32.mrf.mxu3  ;;  %v225_v62 = vadd.f32 %v224_v43, %v196_v60 }
  0xb9   :  { %v198_v50 = vpop.f32.mrf.mxu1 }
  0xba   :  { %v199_v54 = vadd.f32 %v198_v50, %v169_v35  ;;  %v254_v63 = vadd.f32 %v253_v48, %v225_v62 }
  0xbf   :  { %v227_v52 = vpop.f32.mrf.mxu2 }
  0xc0   :  { %v276_v39 = vpop.f32.mrf.mxu0  ;;  %v228_v56 = vadd.f32 %v227_v52, %v199_v54  ;;  %v256_v57 = vpop.f32.mrf.mxu3  ;;  %v457_v54 = vld [vmem:[%s1407_s5 + $0x10] sm:$0xff] }
  0xc1   :  { %v277_v55 = vadd.f32 %v276_v39, %v248_v51 }
  0xc2   :  { %v257_v58 = vadd.f32 %v256_v57, %v228_v56  ;;  %v455_v56 = vld [vmem:[%s1407_s5] sm:$0xff] }
  0xc8   :  { %v279_v45 = vpop.f32.mrf.mxu0 }
  0xc9   :  { %v1243_v47 = vadd.f32 %v279_v45, %v251_v44 }
  0xcb   :  { %294 = vrot.lane.b32.xlu1 %v1243_v47, %s908_s0  ;;  %v827_v26 = vpack.i.bf16 %v277_v55, %v1243_v47 }
  0xd0   :  { %v282_v53 = vpop.f32.mrf.mxu0 }
  0xd1   :  { %v283_v0 = vadd.f32 %v282_v53, %v254_v63  ;;  %v458_v53 = vld [vmem:[%s1407_s5 + $0x18] sm:$0xff] }
  0xd2   :  { %483 = vmatpush.msrb.mxu2 %v458_v53 }
  0xd3   :  { %292 = vrot.lane.b32.xlu1 %v277_v55, %s908_s0 }
  0xd4   :  { %484 = vmatpush.msrb.mxu2 %v457_v54 }
  0xd8   :  { %v285_v59 = vpop.f32.mrf.mxu0 }
  0xd9   :  { %v286_v61 = vadd.f32 %v285_v59, %v257_v58 }
  0xdb   :  { %298 = vrot.lane.b32.xlu0 %v286_v61, %s908_s0  ;;  %v822_v25 = vpack.i.bf16 %v283_v0, %v286_v61 }
  0xe3   :  { %296 = vrot.lane.b32.xlu0 %v283_v0, %s908_s0  ;;  %s768_s0 = sshll.u32 %s1411_s9, 4  ;;  %s913_s9 = smov [#allocation2]   ;;  %s769_s0 = int_to_ptr.hbm [resolvable:$true] %s768_s0 }
  0xe4   :  { %s753_s26 = sshll.u32 %s913_s9, 4  ;;  %s754_s26 = int_to_ptr.vmem [resolvable:$true] %s753_s26 }
 0x13d   :  { %v295_v2 = vpop.permute.xlu1 %294 }
 0x145   :  { %v293_v4 = vpop.permute.xlu1 %292 }
 0x14d   :  { %v299_v1 = vpop.permute.xlu0 %298 }
 0x14e   :  { %790 = vmatpush.xpose.msk.msrb.mxu1 %vm300_vm2, %v299_v1 }
 0x155   :  { %v297_v3 = vpop.permute.xlu0 %296 }
 0x156   :  { %791 = vmatpush.xpose.msk.msrb.mxu1 %vm300_vm2, %v297_v3 }
 0x15a   :  { %792 = vmatpush.xpose.msk.msrb.mxu1 %vm300_vm2, %v295_v2 }
 0x15e   :  { %793 = vmatpush.xpose.msk.msrb.mxu1 %vm300_vm2, %v293_v4 }
 0x161   :  { %794 = vmatmul.msk.f32.vlgmr.msrb.gmra.mxu1 %vm300_vm2, %v277_v55  ;;  %v456_v55 = vld [vmem:[%s1407_s5 + $0x8] sm:$0xff] }
 0x162   :  { %485 = vmatpush.msrb.mxu2 %v456_v55  ;;  %v548_v55 = vld [vmem:[%s1404_s2 + $0x8] sm:$0xff] }
 0x164   :  { %486 = vmatpush.msrb.mxu2 %v455_v56 }
 0x169   :  { %795 = vmatmul.msk.f32.gmra.mxu1 %vm300_vm2, %v1243_v47 }
 0x171   :  { %796 = vmatmul.msk.f32.gmra.mxu1 %vm300_vm2, %v283_v0 }
 0x179   :  { %797 = vmatmul.msk.f32.gmra.mxu1 %vm300_vm2, %v286_v61 }
 0x1de   :  { %v334_v5 = vpop.f32.mrf.mxu1 }
 0x1df   :  { %v346_v7 = vmul.f32 0.35355338, %v334_v5 }
 0x1e1   :  { %v354_v8 = vadd.f32 %v350_v6, %v346_v7 }
 0x1e3   :  { %v359_v9 = vsel %vm358_vm3, %v354_v8, -inf }
 0x1e4   :  { %360 = vmax.xlane.f32.xlu2 %v359_v9 }
 0x1e6   :  { %v337_v10 = vpop.f32.mrf.mxu1 }
 0x1e7   :  { %v347_v12 = vmul.f32 0.35355338, %v337_v10 }
 0x1e9   :  { %v355_v13 = vadd.f32 %v351_v11, %v347_v12 }
 0x1eb   :  { %v362_v14 = vsel %vm358_vm3, %v355_v13, -inf }
 0x1ec   :  { %363 = vmax.xlane.f32.xlu2 %v362_v14 }
 0x1ee   :  { %v340_v15 = vpop.f32.mrf.mxu1 }
 0x1ef   :  { %v348_v17 = vmul.f32 0.35355338, %v340_v15 }
 0x1f1   :  { %v356_v18 = vadd.f32 %v352_v16, %v348_v17 }
 0x1f3   :  { %v365_v19 = vsel %vm358_vm3, %v356_v18, -inf }
 0x1f4   :  { %366 = vmax.xlane.f32.xlu0 %v365_v19 }
 0x1f6   :  { %v343_v20 = vpop.f32.mrf.mxu1 }
 0x1f7   :  { %v349_v22 = vmul.f32 0.35355338, %v343_v20 }
 0x1f9   :  { %v357_v23 = vadd.f32 %v353_v21, %v349_v22 }
 0x1fb   :  { %v368_v24 = vsel %vm358_vm3, %v357_v23, -inf }
 0x1fc   :  { %369 = vmax.xlane.f32.xlu1 %v368_v24 }
 0x204   :  { %823 = vrot.lane.b32.xlu2 %v822_v25, %s909_s13 }
 0x208   :  { %828 = vrot.lane.b32.xlu0 %v827_v26, %s909_s13 }
 0x257   :  { %v361_v27 = vpop.xlane.xlu2 %360 }
 0x258   :  { %v371_v28 = vsub.f32 %v354_v8, %v361_v27 }
 0x25a   :  { %v375_v29 = vmul.f32 1.442695, %v371_v28 }
 0x25c   :  { %832 = vpow2.f32 %v375_v29 }
 0x25f   :  { %v364_v30 = vpop.xlane.xlu2 %363 }
 0x260   :  { %v372_v31 = vsub.f32 %v355_v13, %v364_v30 }
 0x262   :  { %v1272_v32 = vpop.eup %832  ;;  %v377_v33 = vmul.f32 1.442695, %v372_v31 }
 0x263   :  { %v383_v34 = vsel %vm358_vm3, %v1272_v32, 0.0 }
 0x264   :  { %834 = vpow2.f32 %v377_v33  ;;  %384 = vadd.xlane.f32.xlu2 %v383_v34 }
 0x267   :  { %v824_v35 = vpop.permute.xlu2 %823  ;;  %v367_v36 = vpop.xlane.xlu0 %366 }
 0x268   :  { %v373_v37 = vsub.f32 %v356_v18, %v367_v36  ;;  %v825_v38 = vunpack.i.l.bf16 %v824_v35  ;;  %v826_v41 = vunpack.i.h.bf16 %v824_v35 }
 0x26a   :  { %v1276_v39 = vpop.eup %834  ;;  %v379_v40 = vmul.f32 1.442695, %v373_v37  ;;  %528 = vmatpush.msrb.mxu3 %v825_v38 }
 0x26b   :  { %v386_v42 = vsel %vm358_vm3, %v1276_v39, 0.0 }
 0x26c   :  { %836 = vpow2.f32 %v379_v40  ;;  %387 = vadd.xlane.f32.xlu2 %v386_v42  ;;  %529 = vmatpush.msrb.mxu3 %v826_v41 }
 0x26f   :  { %v370_v43 = vpop.xlane.xlu1 %369 }
 0x270   :  { %v374_v44 = vsub.f32 %v357_v23, %v370_v43 }
 0x272   :  { %v1280_v45 = vpop.eup %836  ;;  %v381_v46 = vmul.f32 1.442695, %v374_v44 }
 0x273   :  { %v389_v47 = vsel %vm358_vm3, %v1280_v45, 0.0 }
 0x274   :  { %838 = vpow2.f32 %v381_v46  ;;  %390 = vadd.xlane.f32.xlu2 %v389_v47 }
 0x27a   :  { %v1284_v48 = vpop.eup %838  ;;  %v829_v49 = vpop.permute.xlu0 %828 }
 0x27b   :  { %v392_v50 = vsel %vm358_vm3, %v1284_v48, 0.0  ;;  %v830_v51 = vunpack.i.l.bf16 %v829_v49  ;;  %v831_v52 = vunpack.i.h.bf16 %v829_v49 }
 0x27c   :  { %393 = vadd.xlane.f32.xlu1 %v392_v50  ;;  %v546_v50 = vld [vmem:[%s1406_s4 + $0x8] sm:$0xff] }
 0x27d   :  { %530 = vmatpush.msrb.mxu3 %v830_v51  ;;  %v547_v51 = vld [vmem:[%s1404_s2] sm:$0xff]  ;;  %s911_s2 = smov 128  }
 0x27f   :  { %531 = vmatpush.msrb.mxu3 %v831_v52 }
 0x2d7   :  { %v385_v57 = vpop.xlane.xlu2 %384 }
 0x2d8   :  { %840 = vrcp.f32 %v385_v57  ;;  %v406_v62 = vand.u32 2147483648, %v385_v57  ;;  %v404_v0 = vand.u32 2147483647, %v385_v57  ;;  %vm400_vm5 = vweird.f32 %v385_v57 }
 0x2da   :  { %v407_v3 = vor.u32 1.1754944e-38, %v406_v62  ;;  %vm405_vm7 = vcmp.eq.f32.partialorder %v404_v0, 8.507059e+37  ;;  %v628_v0 = vld [vmem:[%s1408_s6 + $0x10] sm:$0xff] }
 0x2de   :  { %v841_v58 = vpop.eup %840 }
 0x2df   :  { %v396_v59 = vmul.f32 %v841_v58, %v385_v57  ;;  %v388_v60 = vpop.xlane.xlu2 %387  ;;  %vm401_vm4 = vweird.f32 %v841_v58 }
 0x2e0   :  { %842 = vrcp.f32 %v388_v60  ;;  %vm402_vm6 = vmor %vm400_vm5, %vm401_vm4  ;;  %v420_v10 = vand.u32 2147483648, %v388_v60  ;;  %v418_v12 = vand.u32 2147483647, %v388_v60  ;;  %vm414_vm9 = vweird.f32 %v388_v60 }
 0x2e1   :  { %v397_v61 = vsub.f32 1.0, %v396_v59 }
 0x2e2   :  { %v421_v15 = vor.u32 1.1754944e-38, %v420_v10  ;;  %vm419_vm11 = vcmp.eq.f32.partialorder %v418_v12, 8.507059e+37  ;;  %v668_v10 = vld [vmem:[%s1409_s7 + $0x38] sm:$0xff] }
 0x2e3   :  { %v398_v63 = vmul.f32 %v841_v58, %v397_v61  ;;  %684 = vmatpush.msra.mxu2 %v668_v10 }
 0x2e5   :  { %v399_v1 = vadd.f32 %v841_v58, %v398_v63  ;;  %v629_v63 = vld [vmem:[%s1408_s6 + $0x18] sm:$0xff] }
 0x2e6   :  { %v843_v2 = vpop.eup %842  ;;  %648 = vmatpush.msra.mxu1 %v629_v63 }
 0x2e7   :  { %v410_v4 = vmul.f32 %v843_v2, %v388_v60  ;;  %v391_v5 = vpop.xlane.xlu2 %390  ;;  %v403_v6 = vsel %vm402_vm6, %v841_v58, %v399_v1  ;;  %vm415_vm8 = vweird.f32 %v843_v2 }
 0x2e8   :  { %844 = vrcp.f32 %v391_v5  ;;  %v408_v7 = vsel %vm405_vm7, %v407_v3, %v403_v6  ;;  %vm416_vm10 = vmor %vm414_vm9, %vm415_vm8  ;;  %v434_v22 = vand.u32 2147483648, %v391_v5  ;;  %v432_v24 = vand.u32 2147483647, %v391_v5  ;;  %649 = vmatpush.msra.mxu1 %v628_v0  ;;  %v626_v3 = vld [vmem:[%s1408_s6] sm:$0xff] }
 0x2e9   :  { %v411_v8 = vsub.f32 1.0, %v410_v4  ;;  %v451_v9 = vmul.f32 %v1272_v32, %v408_v7  ;;  %vm428_vm13 = vweird.f32 %v391_v5 }
 0x2ea   :  { %v435_v27 = vor.u32 1.1754944e-38, %v434_v22  ;;  %vm433_vm15 = vcmp.eq.f32.partialorder %v432_v24, 8.507059e+37 }
 0x2eb   :  { %v412_v11 = vmul.f32 %v843_v2, %v411_v8  ;;  %798 = vmatmul.msk.f32.vlgmr.msrb.gmra.mxu2 %vm358_vm3, %v451_v9  ;;  %802 = vmatmul.msk.f32.vlgmr.msrb.gmra.mxu3 %vm358_vm3, %v451_v9 }
 0x2ed   :  { %v413_v13 = vadd.f32 %v843_v2, %v412_v11  ;;  %v667_v11 = vld [vmem:[%s1409_s7 + $0x30] sm:$0xff] }
 0x2ee   :  { %v845_v14 = vpop.eup %844  ;;  %685 = vmatpush.msra.mxu2 %v667_v11 }
 0x2ef   :  { %v424_v16 = vmul.f32 %v845_v14, %v391_v5  ;;  %v394_v17 = vpop.xlane.xlu1 %393  ;;  %v417_v18 = vsel %vm416_vm10, %v843_v2, %v413_v13  ;;  %vm429_vm12 = vweird.f32 %v845_v14  ;;  %v627_v2 = vld [vmem:[%s1408_s6 + $0x8] sm:$0xff] }
 0x2f0   :  { %846 = vrcp.f32 %v394_v17  ;;  %v422_v19 = vsel %vm419_vm11, %v421_v15, %v417_v18  ;;  %vm430_vm14 = vmor %vm428_vm13, %vm429_vm12  ;;  %v448_v33 = vand.u32 2147483648, %v394_v17  ;;  %v446_v35 = vand.u32 2147483647, %v394_v17  ;;  %650 = vmatpush.msra.mxu1 %v627_v2 }
 0x2f1   :  { %v425_v20 = vsub.f32 1.0, %v424_v16  ;;  %v452_v21 = vmul.f32 %v1276_v39, %v422_v19  ;;  %vm442_vm1 = vweird.f32 %v394_v17  ;;  %v665_v16 = vld [vmem:[%s1409_s7 + $0x20] sm:$0xff]  ;;  %v664_v19 = vld [vmem:[%s1409_s7 + $0x18] sm:$0xff]  ;;  %vm669_vm11 = vcmask 523264  }
 0x2f2   :  { %v449_v37 = vor.u32 1.1754944e-38, %v448_v33  ;;  %vm447_vm5 = vcmp.eq.f32.partialorder %v446_v35, 8.507059e+37  ;;  %651 = vmatpush.msra.mxu1 %v626_v3 }
 0x2f3   :  { %v426_v23 = vmul.f32 %v845_v14, %v425_v20  ;;  %799 = vmatmul.msk.f32.gmra.mxu2 %vm358_vm3, %v452_v21  ;;  %803 = vmatmul.msk.f32.gmra.mxu3 %vm358_vm3, %v452_v21  ;;  %v663_v21 = vld [vmem:[%s1409_s7 + $0x10] sm:$0xff] }
 0x2f5   :  { %v427_v25 = vadd.f32 %v845_v14, %v426_v23 }
 0x2f6   :  { %v847_v26 = vpop.eup %846 }
 0x2f7   :  { %v438_v28 = vmul.f32 %v847_v26, %v394_v17  ;;  %v431_v29 = vsel %vm430_vm14, %v845_v14, %v427_v25  ;;  %vm443_vm0 = vweird.f32 %v847_v26  ;;  %v666_v14 = vld [vmem:[%s1409_s7 + $0x28] sm:$0xff] }
 0x2f8   :  { %v436_v30 = vsel %vm433_vm15, %v435_v27, %v431_v29  ;;  %vm444_vm4 = vmor %vm442_vm1, %vm443_vm0  ;;  %686 = vmatpush.msra.mxu2 %v666_v14 }
 0x2f9   :  { %v439_v31 = vsub.f32 1.0, %v438_v28  ;;  %v453_v32 = vmul.f32 %v1280_v45, %v436_v30 }
 0x2fa   :  { %687 = vmatpush.msra.mxu2 %v665_v16 }
 0x2fb   :  { %v440_v34 = vmul.f32 %v847_v26, %v439_v31  ;;  %800 = vmatmul.msk.f32.gmra.mxu2 %vm358_vm3, %v453_v32  ;;  %804 = vmatmul.msk.f32.gmra.mxu3 %vm358_vm3, %v453_v32 }
 0x2fc   :  { %688 = vmatpush.msra.mxu2 %v664_v19 }
 0x2fd   :  { %v441_v36 = vadd.f32 %v847_v26, %v440_v34 }
 0x2fe   :  { %689 = vmatpush.msra.mxu2 %v663_v21 }
 0x2ff   :  { %v445_v38 = vsel %vm444_vm4, %v847_v26, %v441_v36 }
 0x300   :  { %v450_v39 = vsel %vm447_vm5, %v449_v37, %v445_v38 }
 0x301   :  { %v454_v40 = vmul.f32 %v1284_v48, %v450_v39  ;;  %v545_v48 = vld [vmem:[%s1406_s4] sm:$0xff]  ;;  %s912_s4 = smov 8  }
 0x303   :  { %801 = vmatmul.msk.f32.gmra.mxu2 %vm358_vm3, %v454_v40  ;;  %805 = vmatmul.msk.f32.gmra.mxu3 %vm358_vm3, %v454_v40 }
 0x36e   :  { %v488_v41 = vpop.f32.mrf.mxu2  ;;  %v533_v42 = vpop.f32.mrf.mxu3 }
 0x36f   :  { %500 = vst.msk [vmem:[#allocation4] sm:$0xff] %vm300_vm2, %v488_v41  ;;  %v662_v41 = vld [vmem:[%s1409_s7 + $0x8] sm:$0xff] }
 0x370   :  { %690 = vmatpush.msra.mxu2 %v662_v41 }
 0x376   :  { %v491_v43 = vpop.f32.mrf.mxu2  ;;  %v536_v44 = vpop.f32.mrf.mxu3 }
 0x377   :  { %501 = vst.msk [vmem:[#allocation4 + $0x8] sm:$0xff] %vm300_vm2, %v491_v43 }
 0x37e   :  { %v494_v45 = vpop.f32.mrf.mxu2  ;;  %v539_v46 = vpop.f32.mrf.mxu3 }
 0x37f   :  { %502 = vst.msk [vmem:[#allocation4 + $0x10] sm:$0xff] %vm300_vm2, %v494_v45 }
 0x386   :  { %v497_v47 = vpop.f32.mrf.mxu2  ;;  %v542_v49 = vpop.f32.mrf.mxu3 }
 0x387   :  { %503 = vst.msk [vmem:[#allocation4 + $0x18] sm:$0xff] %vm300_vm2, %v497_v47  ;;  %567 = vmatpush.msra.mxu0 %v542_v49  ;;  %812 = vmatpush.msra.mxu3 %v542_v49 }
 0x389   :  { %568 = vmatpush.msra.mxu0 %v539_v46  ;;  %813 = vmatpush.msra.mxu3 %v539_v46 }
 0x38b   :  { %569 = vmatpush.msra.mxu0 %v536_v44  ;;  %814 = vmatpush.msra.mxu3 %v536_v44 }
 0x38d   :  { %570 = vmatpush.msra.mxu0 %v533_v42  ;;  %815 = vmatpush.msra.mxu3 %v533_v42  ;;  %v661_v42 = vld [vmem:[%s1409_s7] sm:$0xff]  ;;  %s910_s7 = smov [#allocation4]  }
 0x38e   :  { %806 = vmatmul.msk.f32.vlgmr.msra.gmra.mxu0 %vm358_vm3, %v545_v48  ;;  %807 = vmatmul.msk.f32.vlgmr.msra.gmra.mxu3 %vm358_vm3, %v546_v50  ;;  %s766_s23 = sshll.u32 %s910_s7, 4  ;;  %s767_s23 = int_to_ptr.vmem [resolvable:$true] %s766_s23 }
 0x38f   :  { %691 = vmatpush.msra.mxu2 %v661_v42  ;;  %774 = dma.vmem_to_hbm [thread:$0]  %s767_s23, 512, %s769_s0, [#allocation5], %s911_s2, %s911_s2, %s912_s4  }
 0x40b   :  { %v572_v52 = vpop.f32.mrf.mxu0 }
 0x40c   :  { %v1327_v53 = vadd.f32 %v572_v52, %v547_v51 }
 0x40e   :  { %v578_v54 = vsel %vm358_vm3, %v1327_v53, 0.0  ;;  %v584_v58 = vmul.f32 %v1327_v53, %v1327_v53 }
 0x40f   :  { %579 = vadd.xlane.f32.xlu1 %v578_v54 }
 0x410   :  { %v586_v60 = vsel %vm358_vm3, %v584_v58, 0.0 }
 0x411   :  { %v575_v56 = vpop.f32.mrf.mxu3 }
 0x412   :  { %v1334_v57 = vadd.f32 %v575_v56, %v548_v55 }
 0x414   :  { %v581_v59 = vsel %vm358_vm3, %v1334_v57, 0.0  ;;  %v585_v61 = vmul.f32 %v1334_v57, %v1334_v57 }
 0x415   :  { %582 = vadd.xlane.f32.xlu0 %v581_v59 }
 0x416   :  { %v589_v62 = vsel %vm358_vm3, %v585_v61, 0.0 }
 0x417   :  { %587 = vadd.xlane.f32.xlu1 %v586_v60 }
 0x41f   :  { %590 = vadd.xlane.f32.xlu1 %v589_v62 }
 0x482   :  { %v580_v1 = vpop.xlane.xlu1 %579 }
 0x483   :  { %v592_v4 = vmul.f32 0.03125, %v580_v1 }
 0x485   :  { %v596_v6 = vmul.f32 %v592_v4, %v592_v4  ;;  %v600_v31 = vsub.f32 %v1327_v53, %v592_v4 }
 0x488   :  { %v583_v8 = vpop.xlane.xlu0 %582 }
 0x489   :  { %v593_v12 = vmul.f32 0.03125, %v583_v8 }
 0x48a   :  { %v588_v5 = vpop.xlane.xlu1 %587 }
 0x48b   :  { %v594_v7 = vmul.f32 0.03125, %v588_v5  ;;  %v597_v15 = vmul.f32 %v593_v12, %v593_v12  ;;  %v601_v38 = vsub.f32 %v1334_v57, %v593_v12 }
 0x48d   :  { %v598_v9 = vsub.f32 %v594_v7, %v596_v6 }
 0x48f   :  { %v602_v13 = vadd.f32 1e-05, %v598_v9 }
 0x491   :  { %848 = vrsqrt.f32 %v602_v13  ;;  %vm610_vm6 = vweird.f32 %v602_v13 }
 0x492   :  { %v591_v17 = vpop.xlane.xlu1 %590 }
 0x493   :  { %v595_v18 = vmul.f32 0.03125, %v591_v17 }
 0x495   :  { %v599_v20 = vsub.f32 %v595_v18, %v597_v15 }
 0x497   :  { %v849_v22 = vpop.eup %848  ;;  %v603_v23 = vadd.f32 1e-05, %v599_v20 }
 0x498   :  { %v605_v24 = vmul.f32 %v849_v22, %v602_v13  ;;  %vm611_vm2 = vweird.f32 %v849_v22 }
 0x499   :  { %850 = vrsqrt.f32 %v603_v23  ;;  %vm612_vm7 = vmor %vm610_vm6, %vm611_vm2  ;;  %vm620_vm9 = vweird.f32 %v603_v23 }
 0x49a   :  { %v606_v25 = vmul.f32 %v849_v22, %v605_v24 }
 0x49c   :  { %v607_v26 = vmul.f32 0.5, %v606_v25 }
 0x49e   :  { %v608_v27 = vsub.f32 1.5, %v607_v26 }
 0x49f   :  { %v851_v28 = vpop.eup %850 }
 0x4a0   :  { %v609_v29 = vmul.f32 %v849_v22, %v608_v27  ;;  %v615_v30 = vmul.f32 %v851_v28, %v603_v23  ;;  %vm621_vm8 = vweird.f32 %v851_v28 }
 0x4a1   :  { %vm622_vm10 = vmor %vm620_vm9, %vm621_vm8 }
 0x4a2   :  { %v613_v32 = vsel %vm612_vm7, %v849_v22, %v609_v29  ;;  %v616_v33 = vmul.f32 %v851_v28, %v615_v30 }
 0x4a3   :  { %v624_v34 = vmul.f32 %v613_v32, %v600_v31 }
 0x4a4   :  { %v617_v35 = vmul.f32 0.5, %v616_v33 }
 0x4a5   :  { %808 = vmatmul.msk.f32.vlgmr.msra.gmra.mxu1 %vm358_vm3, %v624_v34 }
 0x4a6   :  { %v618_v36 = vsub.f32 1.5, %v617_v35 }
 0x4a8   :  { %v619_v37 = vmul.f32 %v851_v28, %v618_v36 }
 0x4aa   :  { %v623_v39 = vsel %vm622_vm10, %v851_v28, %v619_v37 }
 0x4ab   :  { %v625_v40 = vmul.f32 %v623_v39, %v601_v38 }
 0x4ad   :  { %809 = vmatmul.msk.f32.gmra.mxu1 %vm358_vm3, %v625_v40 }
 0x522   :  { %v653_v43 = vpop.f32.mrf.mxu1 }
 0x523   :  { %v659_v44 = vmax.f32 %v653_v43, 0.0 }
 0x525   :  { %810 = vmatmul.msk.f32.vlgmr.msra.gmra.mxu2 %vm669_vm11, %v659_v44 }
 0x52a   :  { %v656_v45 = vpop.f32.mrf.mxu1 }
 0x52b   :  { %v660_v46 = vmax.f32 %v656_v45, 0.0 }
 0x52d   :  { %811 = vmatmul.msk.f32.gmra.mxu2 %vm669_vm11, %v660_v46 }
 0x5a8   :  { %v693_v47 = vpop.f32.mrf.mxu2 }
 0x5a9   :  { %v694_v49 = vadd.f32 %v693_v47, %v624_v34 }
 0x5ab   :  { %v699_v48 = vsel %vm358_vm3, %v694_v49, 0.0  ;;  %v705_v50 = vmul.f32 %v694_v49, %v694_v49 }
 0x5ac   :  { %700 = vadd.xlane.f32.xlu1 %v699_v48 }
 0x5ad   :  { %v707_v54 = vsel %vm358_vm3, %v705_v50, 0.0 }
 0x5b0   :  { %v696_v51 = vpop.f32.mrf.mxu2 }
 0x5b1   :  { %v697_v52 = vadd.f32 %v696_v51, %v625_v40 }
 0x5b3   :  { %v702_v53 = vsel %vm358_vm3, %v697_v52, 0.0  ;;  %v706_v55 = vmul.f32 %v697_v52, %v697_v52 }
 0x5b4   :  { %703 = vadd.xlane.f32.xlu2 %v702_v53  ;;  %708 = vadd.xlane.f32.xlu1 %v707_v54 }
 0x5b5   :  { %v710_v56 = vsel %vm358_vm3, %v706_v55, 0.0 }
 0x5bc   :  { %711 = vadd.xlane.f32.xlu2 %v710_v56 }
 0x61f   :  { %v701_v57 = vpop.xlane.xlu1 %700 }
 0x620   :  { %v713_v58 = vmul.f32 0.03125, %v701_v57 }
 0x622   :  { %v717_v61 = vmul.f32 %v713_v58, %v713_v58  ;;  %v721_v15 = vsub.f32 %v694_v49, %v713_v58 }
 0x627   :  { %v704_v59 = vpop.xlane.xlu2 %703  ;;  %v709_v60 = vpop.xlane.xlu1 %708 }
 0x628   :  { %v715_v62 = vmul.f32 0.03125, %v709_v60  ;;  %v714_v0 = vmul.f32 0.03125, %v704_v59 }
 0x62a   :  { %v719_v63 = vsub.f32 %v715_v62, %v717_v61  ;;  %v718_v3 = vmul.f32 %v714_v0, %v714_v0  ;;  %v722_v22 = vsub.f32 %v697_v52, %v714_v0 }
 0x62c   :  { %v723_v1 = vadd.f32 1e-05, %v719_v63 }
 0x62e   :  { %852 = vrsqrt.f32 %v723_v1  ;;  %vm731_vm13 = vweird.f32 %v723_v1 }
 0x62f   :  { %v712_v2 = vpop.xlane.xlu2 %711 }
 0x630   :  { %v716_v4 = vmul.f32 0.03125, %v712_v2 }
 0x632   :  { %v720_v5 = vsub.f32 %v716_v4, %v718_v3 }
 0x634   :  { %v853_v6 = vpop.eup %852  ;;  %v724_v7 = vadd.f32 1e-05, %v720_v5 }
 0x635   :  { %v726_v8 = vmul.f32 %v853_v6, %v723_v1  ;;  %vm732_vm12 = vweird.f32 %v853_v6 }
 0x636   :  { %854 = vrsqrt.f32 %v724_v7  ;;  %vm733_vm14 = vmor %vm731_vm13, %vm732_vm12  ;;  %vm741_vm0 = vweird.f32 %v724_v7 }
 0x637   :  { %v727_v9 = vmul.f32 %v853_v6, %v726_v8 }
 0x639   :  { %v728_v10 = vmul.f32 0.5, %v727_v9 }
 0x63b   :  { %v729_v11 = vsub.f32 1.5, %v728_v10 }
 0x63c   :  { %v855_v12 = vpop.eup %854 }
 0x63d   :  { %v730_v13 = vmul.f32 %v853_v6, %v729_v11  ;;  %v736_v14 = vmul.f32 %v855_v12, %v724_v7  ;;  %vm742_vm15 = vweird.f32 %v855_v12 }
 0x63e   :  { %vm743_vm1 = vmor %vm741_vm0, %vm742_vm15 }
 0x63f   :  { %v734_v16 = vsel %vm733_vm14, %v853_v6, %v730_v13  ;;  %v737_v17 = vmul.f32 %v855_v12, %v736_v14 }
 0x640   :  { %v745_v18 = vmul.f32 %v734_v16, %v721_v15 }
 0x641   :  { %v738_v19 = vmul.f32 0.5, %v737_v17 }
 0x642   :  { %747 = vst.msk [vmem:[#allocation2] sm:$0xff] %vm358_vm3, %v745_v18 }
 0x643   :  { %v739_v20 = vsub.f32 1.5, %v738_v19 }
 0x645   :  { %v740_v21 = vmul.f32 %v855_v12, %v739_v20 }
 0x647   :  { %v744_v23 = vsel %vm743_vm1, %v855_v12, %v740_v21 }
 0x648   :  { %v746_v24 = vmul.f32 %v744_v23, %v722_v22 }
 0x64a   :  { %748 = vst.msk [vmem:[#allocation2 + $0x8] sm:$0xff] %vm358_vm3, %v746_v24 }
 0x64b   :  { %761 = dma.vmem_to_hbm [thread:$0]  %s754_s26, 256, %s756_s29, [#allocation3], %s911_s2, %s911_s2, %s912_s4  }
 0x64c   :  { %904 = dma.done.wait [#allocation3], 256  }
 0x64d   :  { %905 = vsyncadd [#allocation3], 4294967040 }
 0x64e   :  { %906 = dma.done.wait [#allocation5], 512  }
 0x64f   :  { %907 = vsyncadd [#allocation5], 4294966784 }
 0x650   :  { %783 = vsyncpa [#allocation3], 1 }
 0x651   :  { %784 = vsyncpa [#allocation5], 1 }

</bundles_post_ra>
